<compile_context>
chip_gen: v5e
topology: v5e:2x2
jax: 0.10.0
libtpu: 0.0.40
codegen_flags: <defaults>
</compile_context>

<pallas_src>
import functools

import jax
import jax.numpy as jnp
from jax.experimental import pallas as pl
from jax.experimental.pallas import tpu as pltpu


def _frozen_bn_kernel(x_ref, p_ref, o_ref, *, lane_params):
    """y = x * scale + shift on one (row_block, tile_inner) tile.

    p_ref holds scale and shift concatenated:
      lane_params=False: p_ref is (row_block, 2); col 0 = scale, col 1 = shift,
                         broadcast along the lane axis.
      lane_params=True : p_ref is (2, tile_inner); row 0 = scale, row 1 = shift,
                         broadcast along the sublane axis.
    """
    x = x_ref[...].astype(jnp.float32)
    if lane_params:
        scale = p_ref[0:1, :]
        shift = p_ref[1:2, :]
    else:
        scale = p_ref[:, 0:1]
        shift = p_ref[:, 1:2]
    o_ref[...] = (x * scale + shift).astype(o_ref.dtype)


def _round_up(v, m):
    return -(-v // m) * m


def _largest_aligned_divisor(n, unit, cap):
    """Largest multiple of `unit` that divides `n` and is <= cap (None if none)."""
    best = None
    m = unit
    cap = min(n, cap)
    while m <= cap:
        if n % m == 0:
            best = m
        m += unit
    return best


def _choose_tiles(rows, inner, itemsize, sublane_mult, *,
                  max_block_bytes=4 * 1024 * 1024, min_steps=8):
    """Pick (row_block, tile_inner) for a (rows, inner) slab.

    Honors the Mosaic (sublane, 128) block rules, a per-block byte budget (so
    the double-buffered working set fits every generation's VMEM, including
    v7x's 64 MiB), and a minimum-grid-steps floor for megacore / pipelining.
    """
    # Lane tile: largest 128-multiple divisor of `inner` under the budget,
    # assuming the minimum legal row count (sublane_mult).
    if inner % 128 == 0:
        lane_cap = max(128, max_block_bytes // (sublane_mult * itemsize))
        tile_inner = _largest_aligned_divisor(inner, 128, lane_cap)
    else:
        # TODO(synk): lane-pad `inner` up to a multiple of 128 to avoid masked
        # partial stores; only reached when neither HW nor C*HW is 128-aligned.
        tile_inner = inner

    # Row block: largest sublane-aligned divisor of `rows` under the byte
    # budget given tile_inner; the full `rows` dim if it cannot be split.
    if rows % sublane_mult == 0:
        row_cap = max(sublane_mult, max_block_bytes // max(1, tile_inner * itemsize))
        row_block = _largest_aligned_divisor(rows, sublane_mult, row_cap)
    else:
        row_block = rows
        # The forced full-rows block may blow the budget: re-shrink the lanes.
        if inner % 128 == 0 and rows * tile_inner * itemsize > max_block_bytes:
            lane_cap = max(128, max_block_bytes // (rows * itemsize))
            tile_inner = _largest_aligned_divisor(inner, 128, lane_cap)

    # Minimum-grid-steps floor: split further so both v7x TensorCores get work
    # and the BlockSpec pipeline has something to overlap.
    def n_steps(rb, ti):
        return (rows // rb) * (inner // ti)

    while n_steps(row_block, tile_inner) < min_steps:
        new_rb = None
        if rows % sublane_mult == 0 and row_block > sublane_mult:
            new_rb = _largest_aligned_divisor(rows, sublane_mult, row_block - 1)
        if new_rb is not None:
            row_block = new_rb
            continue
        new_ti = None
        if inner % 128 == 0 and tile_inner > 128:
            new_ti = _largest_aligned_divisor(inner, 128, tile_inner - 1)
        if new_ti is not None:
            tile_inner = new_ti
            continue
        break  # tiny input: cannot split any further, accept fewer steps

    return row_block, tile_inner


def frozen_batch_norm_2d(x, weight, bias, running_mean, running_var, eps=1e-5):
    """x: (N, C, H, W); params: (C,). Returns (N, C, H, W), same dtype as x."""
    N, C, H, W = x.shape
    HW = H * W
    itemsize = x.dtype.itemsize
    sublane_mult = {4: 8, 2: 16, 1: 32}.get(itemsize, 8)

    # One-time tiny (C,)-sized precompute of the affine parameters (f32).
    scale_c = weight.astype(jnp.float32) * jax.lax.rsqrt(
        running_var.astype(jnp.float32) + jnp.float32(eps))
    shift_c = bias.astype(jnp.float32) - running_mean.astype(jnp.float32) * scale_c

    if HW % 128 == 0 or (C * HW) % 128 != 0:
        # Row-indexed params: slab (N*C, HW); one (scale, shift) pair per row.
        rows, inner = N * C, HW
        lane_params = False
        params = jnp.stack(
            [jnp.tile(scale_c, N), jnp.tile(shift_c, N)], axis=1)        # (N*C, 2)
    else:
        # HW itself is not lane-aligned (ResNet 49/196/784/3136) but C*HW is:
        # flatten channels into the lane axis and index params by lane.
        rows, inner = N, C * HW
        lane_params = True
        params = jnp.stack(
            [jnp.repeat(scale_c, HW), jnp.repeat(shift_c, HW)], axis=0)  # (2, C*HW)

    x2d = x.reshape(rows, inner)
    row_block, tile_inner = _choose_tiles(rows, inner, itemsize, sublane_mult)
    grid = (rows // row_block, inner // tile_inner)

    x_spec = pl.BlockSpec((row_block, tile_inner), lambda i, j: (i, j))
    if lane_params:
        p_spec = pl.BlockSpec((2, tile_inner), lambda i, j: (0, j))
        p_vmem = _round_up(2, 8) * _round_up(tile_inner, 128) * 4
    else:
        p_spec = pl.BlockSpec((row_block, 2), lambda i, j: (i, 0))
        p_vmem = _round_up(row_block, 8) * 128 * 4

    # Derive the VMEM limit from the real (double-buffered) working set:
    # 2 x-blocks + 2 out-blocks + 2 param-blocks + compiler-scratch margin.
    xo_vmem = (_round_up(row_block, sublane_mult)
               * _round_up(tile_inner, 128) * itemsize)
    vmem_limit = 2 * (2 * xo_vmem + p_vmem) + 4 * 1024 * 1024
    vmem_limit = int(min(max(vmem_limit, 16 * 1024 * 1024), 100 * 1024 * 1024))

    out2d = pl.pallas_call(
        functools.partial(_frozen_bn_kernel, lane_params=lane_params),
        out_shape=jax.ShapeDtypeStruct((rows, inner), x.dtype),
        grid=grid,
        in_specs=[x_spec, p_spec],
        out_specs=pl.BlockSpec((row_block, tile_inner), lambda i, j: (i, j)),
        compiler_params=pltpu.CompilerParams(
            dimension_semantics=("parallel", "parallel"),
            vmem_limit_bytes=vmem_limit,
        ),
    )(x2d, params)

    return out2d.reshape(N, C, H, W)


def _reference(x, w, b, rm, rv, eps):
    """Pure-JAX reference matching the PyTorch FrozenBatchNorm2d forward."""
    C = w.shape[0]
    w4, b4 = w.reshape(1, C, 1, 1), b.reshape(1, C, 1, 1)
    rm4, rv4 = rm.reshape(1, C, 1, 1), rv.reshape(1, C, 1, 1)
    scale = w4 * jax.lax.rsqrt(rv4 + eps)
    return x * scale + (b4 - rm4 * scale)


def _run_case(key, N, C, H, W, eps=1e-5, dtype=jnp.float32):
    k_x, k_w, k_b, k_rm, k_rv = jax.random.split(key, 5)
    x = jax.random.normal(k_x, (N, C, H, W), dtype=dtype)
    weight = jnp.ones((C,), jnp.float32) + 0.1 * jax.random.normal(k_w, (C,), jnp.float32)
    bias = 0.1 * jax.random.normal(k_b, (C,), jnp.float32)
    running_mean = 0.5 * jax.random.normal(k_rm, (C,), jnp.float32)
    running_var = jnp.abs(jax.random.normal(k_rv, (C,), jnp.float32)) + 0.5

    out = jax.block_until_ready(
        frozen_batch_norm_2d(x, weight, bias, running_mean, running_var, eps=eps))
    ref = _reference(x.astype(jnp.float32), weight, bias, running_mean, running_var, eps)

    assert out.shape == x.shape, f"shape mismatch {out.shape} vs {x.shape}"
    assert out.dtype == x.dtype, f"dtype mismatch {out.dtype} vs {x.dtype}"
    assert jnp.allclose(out.astype(jnp.float32), ref, atol=1e-5, rtol=1e-5), \
        f"value mismatch for shape {(N, C, H, W)}"


if __name__ == "__main__":
    root = jax.random.PRNGKey(0)
    k1, k2, k3 = jax.random.split(root, 3)

    # Primary small shape (HW % 128 == 0 -> row-indexed params, lane-dense).
    _run_case(k1, N=2, C=4, H=16, W=16)
    # ResNet-like 7x7 map with C a multiple of 128 (lane-indexed params path).
    _run_case(k2, N=2, C=128, H=7, W=7)
    # Fallback path (neither HW nor C*HW is a multiple of 128).
    _run_case(k3, N=2, C=4, H=7, W=7)

    print("KERNEL_OK")
</pallas_src>

<mosaic_0001>
module attributes {stable_mosaic.version = 11 : i64} {
  func.func @_frozen_bn_kernel(%arg0: i32, %arg1: i32, %arg2: memref<8x128xf32, #tpu.memory_space<vmem>>, %arg3: memref<8x2xf32, #tpu.memory_space<vmem>>, %arg4: memref<8x128xf32, #tpu.memory_space<vmem>>) attributes {dimension_semantics = [#tpu.dimension_semantics<parallel>, #tpu.dimension_semantics<parallel>], iteration_bounds = array<i64: 1, 2>, scalar_prefetch = 0 : i64, scratch_operands = 0 : i64, tpu.core_type = #tpu.core_type<tc>, window_params = [{transform_indices = @transform_0, window_bounds = array<i64: 8, 128>}, {transform_indices = @transform_1, window_bounds = array<i64: 8, 2>}, {transform_indices = @transform_2, window_bounds = array<i64: 8, 128>}]} {
    %c0 = arith.constant 0 : index
    %c0_0 = arith.constant 0 : index
    %0 = vector.load %arg2[%c0, %c0_0] : memref<8x128xf32, #tpu.memory_space<vmem>>, vector<8x128xf32>
    %c0_1 = arith.constant 0 : index
    %c0_2 = arith.constant 0 : index
    %1 = vector.load %arg3[%c0_1, %c0_2] : memref<8x2xf32, #tpu.memory_space<vmem>>, vector<8x1xf32>
    %c0_3 = arith.constant 0 : index
    %c1 = arith.constant 1 : index
    %2 = vector.load %arg3[%c0_3, %c1] : memref<8x2xf32, #tpu.memory_space<vmem>>, vector<8x1xf32>
    %3 = vector.broadcast %1 : vector<8x1xf32> to vector<8x128xf32>
    %4 = arith.mulf %0, %3 : vector<8x128xf32>
    %5 = vector.broadcast %2 : vector<8x1xf32> to vector<8x128xf32>
    %6 = arith.addf %4, %5 : vector<8x128xf32>
    %c0_4 = arith.constant 0 : index
    %c0_5 = arith.constant 0 : index
    %7 = vector.load %arg4[%c0_4, %c0_5] : memref<8x128xf32, #tpu.memory_space<vmem>>, vector<8x128xf32>
    tpu.vector_store %arg4[%c0_4, %c0_5], %6 {strides = array<i32>} : memref<8x128xf32, #tpu.memory_space<vmem>>, vector<8x128xf32>,
    return
  }
  func.func @transform_0(%arg0: i32, %arg1: i32) -> (i32, i32) {
    %c0_i32 = arith.constant 0 : i32
    return %arg0, %arg1 : i32, i32
  }
  func.func @transform_1(%arg0: i32, %arg1: i32) -> (i32, i32) {
    %c0_i32 = arith.constant 0 : i32
    %c0_i32_0 = arith.constant 0 : i32
    return %arg0, %c0_i32 : i32, i32
  }
  func.func @transform_2(%arg0: i32, %arg1: i32) -> (i32, i32) {
    %c0_i32 = arith.constant 0 : i32
    return %arg0, %arg1 : i32, i32
  }
}

</mosaic_0001>

<bundles_post_ra>
// kernel: tpu_custom_call.1
= control target key start
LH: loop header
LB: loop body
LE: loop exit
PB: predicated region body
PF: predicated region fallthrough
CT: control target
= control target key end

     0   :  { %7 = vsyncpa [#allocation3], 0  ;;  %s659_s0 = inlined_call_operand.hbm [shape: f32[8,256], index: 0, kind: input, shape index: {}]   ;;  %s660_s1 = inlined_call_operand.vmem [shape: f32[8,2], index: 1, kind: input, shape index: {}]   ;;  %s661_s2 = inlined_call_operand.hbm [shape: f32[8,256], index: 2, kind: output, shape index: {}]  }
   0x1   :  { %9 = vsyncpa [#allocation3 + $0x1], 0 }
   0x2   :  { %10 = vsyncpa [#allocation4], 0 }
   0x3   :  { %12 = vsyncpa [#allocation4 + $0x1], 0  ;;  %s536_s9 = smov 0   ;;  %s538_s10 = smov 0  }
   0x4   :  { %s540_s11 = smov 0   ;;  %s542_s12 = smov 0  }
   0x5   :  { %s544_s13 = smov 0   ;;  %s546_s14 = smov 0  }
   0x6 LB: > { %s325_s15 = sadd.s32 4294967295, %s517_s14   ;;  %s326_s16 = sadd.s32 4294967294, %s517_s14   ;;  %s517_s14 = sphi %s546_s14, %s18_s14   ;;  %s513_s13 = sphi %s544_s13, %s670_s13   ;;  %s509_s12 = sphi %s542_s12, %s669_s12   ;;  %s505_s11 = sphi %s540_s11, %s668_s11   ;;  %s501_s10 = sphi %s538_s10, %s667_s10   ;;  %s497_s9 = sphi %s536_s9, %s666_s9  }
   0x7   : > { %s27_s17 = sadd.s32 1, %s513_s13  ;;  %s39_s18 = sadd.s32 1, %s505_s11 }
   0x8   : > { %p28_p0 = scmp.ge.s32.totalorder %s27_s17, 2  ;;  %p46_p1 = scmp.ne.s32.totalorder %s505_s11, %s501_s10 }
   0x9   : > { %p47_p2 = scmp.eq.s32.totalorder %s517_s14, 0  ;;  %p52_p3 = scmp.ne.s32.totalorder %s501_s10, %s497_s9 }
   0xa   : > { %s672_s17 = smov (%p28_p0, %s27_s17), 0  ;;  %p53_p5 = scmp.eq.s32.totalorder %s325_s15, 0 }
   0xb   : > { %p577_p4 = por %p47_p2, %p46_p1  ;;  %s35_s20 = ssub.s32 %s513_s13, %s672_s17 }
   0xc   : > { %p104_p6 = scmp.eq.s32.totalorder %s325_s15, 1  ;;  %p37_p7 = scmp.eq.s32.totalorder %s35_s20, 0 }
   0xd   : > { %p583_p8 = por %p53_p5, %p52_p3  ;;  %p110_p10 = scmp.eq.s32.totalorder %s326_s16, 1 }
   0xe   : > { %p587_p9 = por %p104_p6, %p46_p1  ;;  %p329_p12 = scmp.ge.s32.totalorder %s517_s14, 2 }
   0xf   : > { %s592_s23 = scalar_select %p37_p7, %s505_s11, %s39_s18  }
  0x10   : > { %p594_p11 = por %p110_p10, %p52_p3  ;;  %p351_p13 = scmp.lt.s32.totalorder %s517_s14, 2 }
  0x11   : > { %s137_s25 = sand.u32 1, %s505_s11   ;;  %s331_s27 = sshll.u32 %s513_s13, 3 }
  0x12   : > { %s330_s26 = sshll.u32 %s137_s25, 3  ;;  %s147_s30 = scalar_lea.hbm %s659_s0, %s331_s27 }
  0x13   : > { %s141_s3 = scalar_lea.vmem [#allocation2], %s330_s26  ;;  %s149_s5 = sshll.u32 %s147_s30, 4  ;;  %s150_s5 = int_to_ptr.hbm [resolvable:$true] %s149_s5 }
  0x14   : > { %s151_s4 = sshll.u32 %s141_s3, 4  ;;  %p344_p0 = pnand %p351_p13, %p577_p4  ;;  %s152_s4 = int_to_ptr.vmem [resolvable:$true] %s151_s4 }
  0x15   : > { %p332_p1 = scmp.ge.s32.totalorder %s517_s14, 1  ;;  %p156_p2 = scmp.lt.s32.totalorder %s517_s14, 3 }
  0x16   : > { %s138_s6 = scalar_lea.sflag [#allocation3], %s137_s25 }
  0x17   : > { %346 = dma.hbm_to_vmem [thread:$0]  (!%p344_p0), %s150_s5, 128, %s152_s4, %s138_s6  }
  0x18   : > { %p157_p3 = pnand %p332_p1, %p156_p2 }
  0x19   : > { %s610_s7 = sand.u32 (!%p157_p3), 1, %s501_s10  }
  0x1a   : > { %160 = sbr.rel (%p157_p3) target bundleno = 163 (0xa3), region = 28  ;;  %s333_s8 = sshll.u32 (!%p157_p3), %s610_s7, 3 }
  0x1b   : > { %s163_s15 = scalar_lea.sflag (!%p157_p3), [#allocation3], %s610_s7  ;;  %s166_s16 = scalar_lea.vmem (!%p157_p3), [#allocation2], %s333_s8 }
  0x1f   : > { %488 = dma.done.wait (%p583_p8), %s163_s15, 128  }
  0x20   : > { %490 = vsyncadd (%p583_p8), %s163_s15, 4294967168  ;;  %v519_v0 = vmov 0   ;;  %v197_v1 = vld [vmem:[%s660_s1] sm:$0xff]  ;;  %v520_v2 = vmov 1   ;;  %s336_s20 = sshll.u32 %s509_s12, 3  ;;  %s191_s21 = scalar_lea.vmem [#allocation5], %s333_s8 }
  0x21   : > { %403 = vset.pattern.permute.xlu0 %v519_v0  ;;  %s223_s27 = scalar_lea.hbm %s661_s2, %s336_s20  ;;  %v196_v4 = vld [vmem:[%s166_s16] sm:$0xff]  ;;  %s225_s28 = sshll.u32 %s191_s21, 4  ;;  %s226_s28 = int_to_ptr.vmem [resolvable:$true] %s225_s28 }
  0x22   : > { %200 = vperm.xlu0 %403, %v197_v1   ;;  %s227_s29 = sshll.u32 %s223_s27, 4  ;;  %s211_s30 = scalar_lea.sflag [#allocation4], %s610_s7  ;;  %s228_s29 = int_to_ptr.hbm [resolvable:$true] %s227_s29 }
  0x23   : > { %s449_s3 = sshra.s32 %s228_s29, 4  ;;  %s455_s6 = scalar_lea.hbm %s661_s2, 16  ;;  %s450_s3 = int_to_ptr.hbm [resolvable:$true] %s449_s3 }
  0x24   : > { %s451_s4 = scalar_lea.hbm %s450_s3, 8  ;;  %p456_p7 = scmp.lt.s32.totalorder %s450_s3, %s661_s2 }
  0x25   : > { %p452_p4 = scmp.ne.s32.totalorder %s450_s3, %s451_s4  ;;  %p457_p8 = scmp.lt.s32.totalorder %s455_s6, %s451_s4 }
  0x27   : > { %p453_p5 = pnand %p452_p4, %p587_p9  ;;  %p458_p10 = por %p457_p8, %p456_p7 }
  0x29   : > { %p454_p6 = pneg %p453_p5 }
  0x2a   : > { %404 = vset.pattern.permute.xlu0 %v520_v2 }
  0x2b   : > { %205 = vperm.xlu0 %404, %v197_v1   ;;  %p459_p13 = pnand %p458_p10, %p454_p6 }
  0x94   : > { %v201_v3 = vpop.permute.xlu0 %200 }
  0x95   : > { %v203_v5 = vmul.f32 %v201_v3, %v196_v4 }
  0x9d   : > { %v206_v6 = vpop.permute.xlu0 %205 }
  0x9e   : > { %v208_v7 = vadd.f32 %v206_v6, %v203_v5 }
  0xa0   : > { %209 = vst [vmem:[%s191_s21] sm:$0xff] %v208_v7 }
  0xa1   : > { %462 = shalt.err (!%p459_p13)
}
  0xa2   : > { %341 = dma.vmem_to_hbm [thread:$0]  (%p587_p9), %s226_s28, 128, %s228_s29, %s211_s30  }
  0xa3 PF: > { %s239_s7 = sand.u32 1, %s497_s9   ;;  %p348_p0 = pnand %p329_p12, %p594_p11 }
  0xa4   : > { %s240_s16 = scalar_lea.sflag [#allocation4], %s239_s7 }
  0xa5   : > { %p349_p1 = pneg %p348_p0 }
  0xa7   : > { %492 = dma.done.wait (%p349_p1), %s240_s16, 128  }
  0xa8   : > { %494 = vsyncadd (%p349_p1), %s240_s16, 4294967168  ;;  %s18_s14 = sadd.s32 1, %s517_s14   ;;  %s666_s9 = smov %s501_s10 }
  0xa9   : > { %p15_p2 = scmp.ge.s32.totalorder %s18_s14, 4   ;;  %s667_s10 = smov %s505_s11 }
  0xaa   : > { %s668_s11 = smov %s592_s23  ;;  %s669_s12 = smov %s513_s13 }
  0xab   : > { %s670_s13 = smov %s672_s17  ;;  %17 = sbr.rel (!%p15_p2) target bundleno = 6 (0x6), region = 76 }
  0xb0   :  { %246 = vsyncpa [#allocation3], 1 }
  0xb1   :  { %248 = vsyncpa [#allocation3 + $0x1], 1 }
  0xb2   :  { %249 = vsyncpa [#allocation4], 1 }
  0xb3   :  { %251 = vsyncpa [#allocation4 + $0x1], 1 }

</bundles_post_ra>
